<compile_context>
chip_gen: v7x
topology: tpu7x:2x2x1
jax: 0.10.0
libtpu: 0.0.40
codegen_flags: <defaults>
</compile_context>

<pallas_src>
import jax
import jax.numpy as jnp
from jax.experimental import pallas as pl
from jax.experimental.pallas import tpu as pltpu


def gating_kernel(emb_ref, w_ref, b_ref, out_ref):
    emb = emb_ref[...]                                            # (tm, D)
    # Linear: emb @ W (W already [in, out]) + b, f32 accumulation on the MXU.
    logits = jnp.dot(emb, w_ref[...], preferred_element_type=jnp.float32)
    gate = jax.nn.sigmoid(logits + b_ref[...])                    # EUP exp + VPU
    out_ref[...] = (emb.astype(jnp.float32) * gate).astype(out_ref.dtype)


def _vmem_capacity_bytes():
    try:
        return int(pltpu.get_tpu_info().vmem_capacity_bytes)
    except Exception:
        return 64 * 1024 * 1024          # v7x per-TC capacity; safe lower bound


def gating_layer(emb, weight, bias, *, tm=1024):
    """out = emb * sigmoid(emb @ weight.T + bias); weight is PyTorch-style [out, in]."""
    N, dim = emb.shape
    out_dtype = emb.dtype
    elt = jnp.dtype(emb.dtype).itemsize

    # Hoist the transpose out of the kernel body: store W as [in, out].
    w_t = jnp.asarray(weight).T.astype(emb.dtype)
    b = jnp.asarray(bias).astype(jnp.float32)

    # Lane-dense packing: fold `pack` logical rows into one 128-lane row when dim << 128.
    pack = 128 // dim if (dim < 128 and 128 % dim == 0) else 1
    if pack > 1:
        w_t = jnp.kron(jnp.eye(pack, dtype=w_t.dtype), w_t)       # block-diagonal [128,128]
        b = jnp.tile(b, pack)
    D = dim * pack
    b2 = b.reshape(1, D)
    weight_bytes = D * D * w_t.dtype.itemsize

    # --- tile sizing against the actual chip's VMEM ---------------------------------
    cap = _vmem_capacity_bytes()
    fixed = 2 * weight_bytes + 2 * 4 * D                          # double-buffered W + bias
    # per packed-row bytes: emb + out tiles (2 bufs each) + one f32 logits temp
    row_bytes = 4 * D * max(elt, 4) + 2 * D * 4
    budget = max(0, (6 * cap) // 10 - fixed)
    max_tm = max(8, (budget // row_bytes) // 8 * 8)

    n_pack_rows = -(-N // pack)                                   # ceil(N / pack)
    tm_eff = min(tm, max_tm, ((n_pack_rows + 7) // 8) * 8)
    tm_eff = max(8, (tm_eff // 8) * 8)

    n_tiles = -(-n_pack_rows // tm_eff)
    n_pack_rows_padded = n_tiles * tm_eff
    n_rows_padded = n_pack_rows_padded * pack

    x = emb
    if n_rows_padded != N:                                        # pad ragged rows (zeros are benign)
        x = jnp.pad(x, ((0, n_rows_padded - N), (0, 0)))
    x = x.reshape(n_pack_rows_padded, D)

    est = fixed + tm_eff * row_bytes
    vmem_limit = int(min(cap, max(32 * 1024 * 1024, (5 * est) // 4)))

    out = pl.pallas_call(
        gating_kernel,
        out_shape=jax.ShapeDtypeStruct((n_pack_rows_padded, D), out_dtype),
        grid_spec=pltpu.PrefetchScalarGridSpec(
            num_scalar_prefetch=0,
            grid=(n_tiles,),
            in_specs=[
                pl.BlockSpec((tm_eff, D), lambda i: (i, 0)),      # packed emb row tile
                pl.BlockSpec((D, D), lambda i: (0, 0)),           # resident weight [in, out]
                pl.BlockSpec((1, D), lambda i: (0, 0)),           # bias
            ],
            out_specs=pl.BlockSpec((tm_eff, D), lambda i: (i, 0)),
        ),
        compiler_params=pltpu.CompilerParams(
            dimension_semantics=("parallel",),
            vmem_limit_bytes=vmem_limit,
        ),
        cost_estimate=pl.CostEstimate(
            flops=2 * N * dim * dim,
            transcendentals=N * dim,
            bytes_accessed=2 * N * dim * elt + dim * dim * elt + dim * 4,
        ),
    )(x, w_t, b2)

    return out.reshape(n_rows_padded, dim)[:N]


def gating_layer_ref(emb, weight, bias):
    # pure-JAX reference of the PyTorch forward
    return emb * jax.nn.sigmoid(emb @ weight.T + bias)


if __name__ == "__main__":
    key = jax.random.PRNGKey(0)

    # --- case 1: small dim (32) -> exercises the lane-dense packing path ---
    dim, N = 32, 16
    k_emb, k_w, k_b, key = jax.random.split(key, 4)
    bound = 1.0 / jnp.sqrt(dim)
    emb = jax.random.normal(k_emb, (N, dim), dtype=jnp.float32)
    weight = jax.random.uniform(k_w, (dim, dim), jnp.float32, -bound, bound)
    bias = jax.random.uniform(k_b, (dim,), jnp.float32, -bound, bound)

    out = jax.block_until_ready(gating_layer(emb, weight, bias))
    ref = gating_layer_ref(emb, weight, bias)
    assert out.shape == ref.shape
    assert jnp.allclose(out, ref, atol=1e-5, rtol=1e-5), "mismatch vs reference (dim=32)"

    # --- case 2: lane-aligned dim (128), ragged N -> exercises row-padding path ---
    dim2, N2 = 128, 20
    k_emb2, k_w2, k_b2 = jax.random.split(key, 3)
    bound2 = 1.0 / jnp.sqrt(dim2)
    emb2 = jax.random.normal(k_emb2, (N2, dim2), dtype=jnp.float32)
    weight2 = jax.random.uniform(k_w2, (dim2, dim2), jnp.float32, -bound2, bound2)
    bias2 = jax.random.uniform(k_b2, (dim2,), jnp.float32, -bound2, bound2)

    out2 = jax.block_until_ready(gating_layer(emb2, weight2, bias2))
    ref2 = gating_layer_ref(emb2, weight2, bias2)
    assert out2.shape == ref2.shape
    assert jnp.allclose(out2, ref2, atol=1e-5, rtol=1e-5), "mismatch vs reference (dim=128)"

    print("KERNEL_OK")
</pallas_src>

<mosaic_0001>
module attributes {stable_mosaic.version = 11 : i64} {
  func.func @gating_kernel(%arg0: i32, %arg1: memref<8x128xf32, #tpu.memory_space<vmem>>, %arg2: memref<128x128xf32, #tpu.memory_space<vmem>>, %arg3: memref<1x128xf32, #tpu.memory_space<vmem>>, %arg4: memref<8x128xf32, #tpu.memory_space<vmem>>) attributes {dimension_semantics = [#tpu.dimension_semantics<parallel>], iteration_bounds = array<i64: 1>, scalar_prefetch = 0 : i64, scratch_operands = 0 : i64, tpu.core_type = #tpu.core_type<tc>, window_params = [{transform_indices = @transform_0, window_bounds = array<i64: 8, 128>}, {pipeline_mode = #tpu.pipeline_mode<synchronous>, transform_indices = @transform_1, window_bounds = array<i64: 128, 128>}, {pipeline_mode = #tpu.pipeline_mode<synchronous>, transform_indices = @transform_2, window_bounds = array<i64: 1, 128>}, {transform_indices = @transform_3, window_bounds = array<i64: 8, 128>}]} {
    %c0 = arith.constant 0 : index
    %c0_0 = arith.constant 0 : index
    %0 = vector.load %arg1[%c0, %c0_0] : memref<8x128xf32, #tpu.memory_space<vmem>>, vector<8x128xf32>
    %c0_1 = arith.constant 0 : index
    %c0_2 = arith.constant 0 : index
    %1 = vector.load %arg2[%c0_1, %c0_2] : memref<128x128xf32, #tpu.memory_space<vmem>>, vector<128x128xf32>
    %cst = arith.constant dense<0.000000e+00> : vector<8x128xf32>
    %2 = tpu.matmul %0, %1, %cst {dimension_numbers = #tpu.dot_dimension_numbers<[1], [0], [0], [1], [0, 0, 1, 1], [], []>} : vector<8x128xf32>, vector<128x128xf32>, vector<8x128xf32> -> vector<8x128xf32>
    %c0_3 = arith.constant 0 : index
    %c0_4 = arith.constant 0 : index
    %3 = vector.load %arg3[%c0_3, %c0_4] : memref<1x128xf32, #tpu.memory_space<vmem>>, vector<1x128xf32>
    %4 = vector.broadcast %3 : vector<1x128xf32> to vector<8x128xf32>
    %5 = arith.addf %2, %4 : vector<8x128xf32>
    %6 = arith.negf %5 : vector<8x128xf32>
    %7 = math.exp %6 : vector<8x128xf32>
    %cst_5 = arith.constant 1.000000e+00 : f32
    %8 = vector.broadcast %cst_5 : f32 to vector<8x128xf32>
    %9 = arith.addf %8, %7 : vector<8x128xf32>
    %10 = arith.divf %8, %9 : vector<8x128xf32>
    %11 = arith.mulf %0, %10 : vector<8x128xf32>
    %c0_6 = arith.constant 0 : index
    %c0_7 = arith.constant 0 : index
    %12 = vector.load %arg4[%c0_6, %c0_7] : memref<8x128xf32, #tpu.memory_space<vmem>>, vector<8x128xf32>
    tpu.vector_store %arg4[%c0_6, %c0_7], %11 {strides = array<i32>} : memref<8x128xf32, #tpu.memory_space<vmem>>, vector<8x128xf32>,
    return
  }
  func.func @transform_0(%arg0: i32) -> (i32, i32) {
    %c0_i32 = arith.constant 0 : i32
    %c0_i32_0 = arith.constant 0 : i32
    return %arg0, %c0_i32 : i32, i32
  }
  func.func @transform_1(%arg0: i32) -> (i32, i32) {
    %c0_i32 = arith.constant 0 : i32
    %c0_i32_0 = arith.constant 0 : i32
    %c0_i32_1 = arith.constant 0 : i32
    return %c0_i32, %c0_i32_0 : i32, i32
  }
  func.func @transform_2(%arg0: i32) -> (i32, i32) {
    %c0_i32 = arith.constant 0 : i32
    %c0_i32_0 = arith.constant 0 : i32
    %c0_i32_1 = arith.constant 0 : i32
    return %c0_i32, %c0_i32_0 : i32, i32
  }
  func.func @transform_3(%arg0: i32) -> (i32, i32) {
    %c0_i32 = arith.constant 0 : i32
    %c0_i32_0 = arith.constant 0 : i32
    return %arg0, %c0_i32 : i32, i32
  }
}

</mosaic_0001>

<bundles_post_ra>
// kernel: tpu_custom_call.1
= control target key start
LH: loop header
LB: loop body
LE: loop exit
PB: predicated region body
PF: predicated region fallthrough
CT: control target
= control target key end

     0   :  { %8 = vsyncpa [#allocation3], 0  ;;  %s395_s0 = inlined_call_operand.hbm [shape: f32[8,128], index: 0, kind: input, shape index: {}]   ;;  %s396_s1 = inlined_call_operand.hbm [shape: f32[128,128], index: 1, kind: input, shape index: {}]   ;;  %s397_s2 = inlined_call_operand.vmem [shape: f32[1,128], index: 2, kind: input, shape index: {}]   ;;  %s398_s3 = inlined_call_operand.hbm [shape: f32[8,128], index: 3, kind: output, shape index: {}]  }
   0x1   :  { %9 = vsyncpa [#allocation6], 0 }
   0x2   :  { %10 = vsyncpa [#allocation4], 0  ;;  %s321_s12 = smov [#allocation2]   ;;  %s322_s14 = smov [#allocation5]  }
   0x3   :  { %s17_s13 = sshll.u32 %s321_s12, 4  ;;  %s26_s15 = sshll.u32 %s322_s14, 4  ;;  %s18_s13 = int_to_ptr.vmem [resolvable:$true] %s17_s13  ;;  %s349_s15 = int_to_ptr.vmem [resolvable:$true] %s26_s15 }
   0x4   :  { %s249_s18 = scalar_lea.hbm %s395_s0, 128 }
   0x5   :  { %p250_p0 = scmp.ne.s32.totalorder %s395_s0, %s249_s18  ;;  %p253_p1 = scmp.lt.u32.totalorder %s249_s18, %s395_s0 }
   0x7   :  { %p255_p2 = pnand %p253_p1, %p250_p0 }
   0x9   :  { %258 = shalt.err (!%p255_p2)
}
   0xa   :  { %s259_s23 = scalar_lea.vmem %s18_s13, 128  ;;  %p264_p4 = scmp.lt.s32.totalorder %s18_s13, %s18_s13 }
   0xb   :  { %p260_p3 = scmp.ne.s32.totalorder %s18_s13, %s259_s23  ;;  %p265_p5 = scmp.lt.s32.totalorder %s259_s23, %s259_s23 }
   0xd   :  { %p266_p6 = por %p265_p5, %p264_p4 }
   0xf   :  { %p267_p7 = pnand %p266_p6, %p260_p3 }
  0x11   :  { %270 = shalt.err (!%p267_p7)
}
  0x12   :  { %20 = dma.hbm_to_vmem [thread:$0]  %s395_s0, 128, %s18_s13, [#allocation3]  }
  0x13   :  { %s271_s28 = scalar_lea.hbm %s396_s1, 2048 }
  0x14   :  { %p272_p8 = scmp.ne.s32.totalorder %s396_s1, %s271_s28  ;;  %p275_p9 = scmp.lt.u32.totalorder %s271_s28, %s396_s1 }
  0x16   :  { %p277_p10 = pnand %p275_p9, %p272_p8 }
  0x18   :  { %280 = shalt.err (!%p277_p10)
}
  0x19   :  { %s281_s6 = scalar_lea.vmem %s349_s15, 2048  ;;  %p286_p12 = scmp.lt.s32.totalorder %s349_s15, %s349_s15 }
  0x1a   :  { %p282_p11 = scmp.ne.s32.totalorder %s349_s15, %s281_s6  ;;  %p287_p13 = scmp.lt.s32.totalorder %s281_s6, %s281_s6 }
  0x1c   :  { %p288_p0 = por %p287_p13, %p286_p12 }
  0x1e   :  { %p289_p1 = pnand %p288_p0, %p282_p11 }
  0x20   :  { %292 = shalt.err (!%p289_p1)
}
  0x21   :  { %s323_s0 = smov 128   ;;  %s324_s7 = smov 8  }
  0x22   :  { %32 = dma.hbm_to_vmem [thread:$0]  %s396_s1, 2048, %s349_s15, [#allocation6], %s323_s0, %s323_s0, %s324_s7  }
  0x23   :  { %315 = dma.done.wait [#allocation3], 128  }
  0x24   :  { %316 = vsyncadd [#allocation3], 4294967168 }
  0x25   :  { %317 = dma.done.wait [#allocation6], 2048  }
  0x26   :  { %318 = vsyncadd [#allocation6], 4294965248  ;;  %v325_v0 = vmov 0.0|0.0   ;;  %vm326_vm0 = vmmov 0   ;;  %v327_v1 = vmov 0.0   ;;  %v42_v2 = vld [vmem:[#allocation5] sm:$0xff] }
  0x27   :  { %213 = vmatprep.subr.bf16.mxu0 %v325_v0  ;;  %210 = vmatprep.mubr.msk.f32.mxu0 %vm326_vm0, %v327_v1  ;;  %v43_v3 = vld [vmem:[#allocation5 + $0x8] sm:$0xff]  ;;  %v44_v4 = vld [vmem:[#allocation5 + $0x10] sm:$0xff]  ;;  %v45_v6 = vld [vmem:[#allocation5 + $0x18] sm:$0xff]  ;;  %s328_s11 = smov [#allocation7]  }
  0x28   :  { %v214_v5 = vpack.c.bf16 %v43_v3, %v42_v2  ;;  %v217_v7 = vpack.c.bf16 %v45_v6, %v44_v4  ;;  %v46_v8 = vld [vmem:[#allocation5 + $0x20] sm:$0xff]  ;;  %v47_v9 = vld [vmem:[#allocation5 + $0x28] sm:$0xff]  ;;  %v48_v11 = vld [vmem:[#allocation5 + $0x30] sm:$0xff]  ;;  %s149_s12 = sshll.u32 %s328_s11, 4  ;;  %s150_s12 = int_to_ptr.vmem [resolvable:$true] %s149_s12 }
  0x29   :  { %v220_v10 = vpack.c.bf16 %v47_v9, %v46_v8  ;;  %v49_v12 = vld [vmem:[#allocation5 + $0x38] sm:$0xff]  ;;  %v50_v14 = vld [vmem:[#allocation5 + $0x40] sm:$0xff]  ;;  %v51_v15 = vld [vmem:[#allocation5 + $0x48] sm:$0xff]  ;;  %s293_s13 = scalar_lea.vmem %s150_s12, 128  ;;  %p298_p3 = scmp.lt.s32.totalorder %s150_s12, %s150_s12 }
  0x2a   :  { %215 = vmatpush3.bf16.msra.mxu0 %v214_v5  ;;  %v223_v13 = vpack.c.bf16 %v49_v12, %v48_v11  ;;  %v226_v16 = vpack.c.bf16 %v51_v15, %v50_v14  ;;  %v52_v17 = vld [vmem:[#allocation5 + $0x50] sm:$0xff]  ;;  %v53_v18 = vld [vmem:[#allocation5 + $0x58] sm:$0xff]  ;;  %v54_v20 = vld [vmem:[#allocation5 + $0x60] sm:$0xff]  ;;  %p294_p2 = scmp.ne.s32.totalorder %s150_s12, %s293_s13  ;;  %p299_p4 = scmp.lt.s32.totalorder %s293_s13, %s293_s13 }
  0x2b   :  { %216 = vmatprep.subr.bf16.mxu0 %v325_v0  ;;  %v229_v19 = vpack.c.bf16 %v53_v18, %v52_v17  ;;  %v55_v21 = vld [vmem:[#allocation5 + $0x68] sm:$0xff]  ;;  %v56_v23 = vld [vmem:[#allocation5 + $0x70] sm:$0xff]  ;;  %v57_v24 = vld [vmem:[#allocation5 + $0x78] sm:$0xff] }
  0x2c   :  { %v232_v22 = vpack.c.bf16 %v55_v21, %v54_v20  ;;  %v235_v25 = vpack.c.bf16 %v57_v24, %v56_v23  ;;  %v41_v26 = vld [vmem:[#allocation2] sm:$0xff]  ;;  %p300_p5 = por %p299_p4, %p298_p3 }
  0x2d   :  { %v159_v27 = vld [vmem:[%s397_s2] ss:$0 sm:$0xff] }
  0x2e   :  { %218 = vmatpush3.bf16.msra.mxu0 %v217_v7  ;;  %p301_p6 = pnand %p300_p5, %p294_p2 }
  0x2f   :  { %219 = vmatprep.subr.bf16.mxu0 %v325_v0 }
  0x32   :  { %221 = vmatpush3.bf16.msra.mxu0 %v220_v10 }
  0x33   :  { %222 = vmatprep.subr.bf16.mxu0 %v325_v0 }
  0x36   :  { %224 = vmatpush3.bf16.msra.mxu0 %v223_v13 }
  0x37   :  { %225 = vmatprep.subr.bf16.mxu0 %v325_v0 }
  0x3a   :  { %227 = vmatpush3.bf16.msra.mxu0 %v226_v16 }
  0x3b   :  { %228 = vmatprep.subr.bf16.mxu0 %v325_v0 }
  0x3e   :  { %230 = vmatpush3.bf16.msra.mxu0 %v229_v19 }
  0x3f   :  { %231 = vmatprep.subr.bf16.mxu0 %v325_v0 }
  0x42   :  { %233 = vmatpush3.bf16.msra.mxu0 %v232_v22 }
  0x43   :  { %234 = vmatprep.subr.bf16.mxu0 %v325_v0 }
  0x46   :  { %236 = vmatpush3.bf16.msra.mxu0 %v235_v25 }
  0x49   :  { %211 = vmatmul.mubr.f32.vlgmr.msra.gmra.mrb[0].mxu0 %v41_v26 }
 0x11c   :  { %v131_v28 = vpop.f32.mrb[0].mxu0 }
 0x11d   :  { %v132_v29 = vadd.f32 %v159_v27, %v131_v28  ;;  %v212_v30 = vpop.f32.mrb[1].mxu0 }
 0x11f   :  { %v160_v31 = vmul.f32 -1.442695, %v132_v29 }
 0x121   :  { %245 = vpow2.f32 %v160_v31 }
 0x12b   :  { %v246_v32 = vpop.eup %245 }
 0x12c   :  { %v138_v33 = vadd.f32 1.0, %v246_v32 }
 0x12e   :  { %247 = vrcp.f32 %v138_v33 }
 0x138   :  { %v248_v34 = vpop.eup %247 }
 0x139   :  { %v141_v35 = vmul.f32 %v248_v34, %v41_v26 }
 0x13b   :  { %142 = vst [vmem:[#allocation7] sm:$0xff] %v141_v35 }
 0x13c   :  { %304 = shalt.err (!%p301_p6)
}
 0x13d   :  { %s305_s15 = scalar_lea.hbm %s398_s3, 128 }
 0x13e   :  { %p306_p7 = scmp.ne.s32.totalorder %s398_s3, %s305_s15  ;;  %p309_p8 = scmp.lt.u32.totalorder %s305_s15, %s398_s3 }
 0x140   :  { %p311_p9 = pnand %p309_p8, %p306_p7 }
 0x142   :  { %314 = shalt.err (!%p311_p9)
}
 0x143   :  { %152 = dma.vmem_to_hbm [thread:$0]  %s150_s12, 128, %s398_s3, [#allocation4]  }
 0x144   :  { %319 = dma.done.wait [#allocation4], 128  }
 0x145   :  { %320 = vsyncadd [#allocation4], 4294967168 }
 0x146   :  { %156 = vsyncpa [#allocation3], 1 }
 0x147   :  { %157 = vsyncpa [#allocation6], 1 }
 0x148   :  { %158 = vsyncpa [#allocation4], 1 }

</bundles_post_ra>
